<compile_context>
chip_gen: v7x
topology: tpu7x:2x2x1
jax: 0.10.0
libtpu: 0.0.40
codegen_flags: <defaults>
</compile_context>

<pallas_src>
import functools

import numpy as np

import jax
import jax.numpy as jnp
from jax import lax
from jax.experimental import pallas as pl
from jax.experimental.pallas import tpu as pltpu


_VMEM_LIMIT = 32 * 1024 * 1024          # fits scoped VMEM on v5e/v6e/v7x
_KRON_BYTES_LIMIT = 4 * 1024 * 1024     # single-matmul path weight cap


# ---------------------------------------------------------------------------
# Bilinear interpolation matrices (align_corners=True), built once in numpy
# ---------------------------------------------------------------------------
def _interp_matrix_np(out_size: int, in_size: int) -> np.ndarray:
    """Row-interpolation matrix (out_size, in_size), align_corners=True."""
    if in_size == 1:
        return np.ones((out_size, 1), np.float32)
    if out_size == 1:
        pos = np.zeros((1,), np.float64)
    else:
        pos = np.arange(out_size, dtype=np.float64) * (
            (in_size - 1) / (out_size - 1))
    lo = np.clip(np.floor(pos).astype(np.int64), 0, in_size - 2)
    frac = (pos - lo).astype(np.float32)
    m = np.zeros((out_size, in_size), np.float32)
    m[np.arange(out_size), lo] += 1.0 - frac
    m[np.arange(out_size), lo + 1] += frac
    return m


@functools.lru_cache(maxsize=None)
def _kron_matrix_np(in_h, in_w, out_h, out_w):
    """K[(h*W+x), (a*iW+w)] = Wy[a,h]*Wx[w,x]  ->  out_flat = img_flat @ K."""
    wy = _interp_matrix_np(out_h, in_h)                    # (iH, H)
    wx = _interp_matrix_np(out_w, in_w)                    # (iW, W)
    return np.kron(wy.T, wx.T).astype(np.float32)          # (H*W, iH*iW)


@functools.lru_cache(maxsize=None)
def _interp_matrices_np(in_h, in_w, out_h, out_w):
    wy = _interp_matrix_np(out_h, in_h)                    # (iH, H)
    wxt = _interp_matrix_np(out_w, in_w).T                 # (W, iW)
    return wy, wxt


def _choose_tm(m, per_image_bytes, target_block_bytes=2 << 20, min_grid=8):
    """Sublane-aligned block rows: ~target-sized blocks, >= min_grid steps."""
    tm = max(1, target_block_bytes // max(per_image_bytes, 1))
    if pl.cdiv(m, tm) < min_grid:       # keep enough steps for pipelining / 2 TCs
        tm = max(1, m // min_grid)
    tm = max(8, (tm // 8) * 8)          # multiple of 8 (sublane dim of the block)
    return tm


# ---------------------------------------------------------------------------
# Resize kernels
# ---------------------------------------------------------------------------
def _resize_kron_kernel(k_ref, img_ref, out_ref):
    # k_ref: (H*W, iH*iW) f32 resident; img_ref: (tm, H*W); out_ref: (tm, iH*iW)
    out_ref[...] = jnp.dot(img_ref[...], k_ref[...],
                           preferred_element_type=jnp.float32)


def _resize_sep_kernel(wy_ref, wxt_ref, img_ref, out_ref, *, H, W, iH, iW):
    # Fallback (large interp shapes): separable passes, lane-dense in/out.
    tm = img_ref.shape[0]
    img = img_ref[...].reshape(tm * H, W)
    tmp = jnp.dot(img, wxt_ref[...],
                  preferred_element_type=jnp.float32)          # (tm*H, iW)
    tmp = tmp.reshape(tm, H, iW)
    out = lax.dot_general(wy_ref[...], tmp,
                          dimension_numbers=(((1,), (1,)), ((), ())),
                          preferred_element_type=jnp.float32)  # (iH, tm, iW)
    out_ref[...] = jnp.transpose(out, (1, 0, 2)).reshape(tm, iH * iW)


def _resize_common(x2d, M, kernel, weight_arrays, weight_specs, HW, iHW, tm):
    Mp = pl.cdiv(M, tm) * tm
    if Mp != M:
        x2d = jnp.pad(x2d, ((0, Mp - M), (0, 0)))
    grid = (Mp // tm,)
    cost = pl.CostEstimate(flops=2 * M * HW * iHW, transcendentals=0,
                           bytes_accessed=(M * HW + M * iHW + HW * iHW) * 4)
    out = pl.pallas_call(
        kernel,
        out_shape=jax.ShapeDtypeStruct((Mp, iHW), jnp.float32),
        grid=grid,
        in_specs=list(weight_specs) + [pl.BlockSpec((tm, HW), lambda g: (g, 0))],
        out_specs=pl.BlockSpec((tm, iHW), lambda g: (g, 0)),
        compiler_params=pltpu.CompilerParams(
            dimension_semantics=("parallel",),
            vmem_limit_bytes=_VMEM_LIMIT),
        cost_estimate=cost,
    )(*weight_arrays, x2d)
    return out[:M]


def bilinear_resize(video_flat: jnp.ndarray, out_hw) -> jnp.ndarray:
    """(M, H, W) f32 -> (M, iH, iW) f32, bilinear, align_corners=True."""
    M, H, W = video_flat.shape
    iH, iW = out_hw
    HW, iHW = H * W, iH * iW
    x2d = video_flat.reshape(M, HW).astype(jnp.float32)      # lane-dense slab

    if HW * iHW * 4 <= _KRON_BYTES_LIMIT:
        kmat = jnp.asarray(_kron_matrix_np(H, W, iH, iW))     # (HW, iHW) f32
        per_img = (HW + iHW) * 4 * 2                          # in+out, dbl-buf
        tm = _choose_tm(M, per_img)
        out = _resize_common(
            x2d, M, _resize_kron_kernel, (kmat,),
            (pl.BlockSpec((HW, iHW), lambda g: (0, 0)),), HW, iHW, tm)
    else:
        wy_np, wxt_np = _interp_matrices_np(H, W, iH, iW)
        wy, wxt = jnp.asarray(wy_np), jnp.asarray(wxt_np)
        per_img = (HW + iHW + H * iW) * 4 * 2
        tm = _choose_tm(M, per_img, target_block_bytes=1 << 20)
        out = _resize_common(
            x2d, M,
            functools.partial(_resize_sep_kernel, H=H, W=W, iH=iH, iW=iW),
            (wy, wxt),
            (pl.BlockSpec((iH, H), lambda g: (0, 0)),
             pl.BlockSpec((W, iW), lambda g: (0, 0))), HW, iHW, tm)

    return out.reshape(M, iH, iW)


# ---------------------------------------------------------------------------
# Post-processing kernel: vis threshold, query scatter, rescale-to-origin
# ---------------------------------------------------------------------------
def _post_kernel(qt_ref, qx_ref, qy_ref, tx_ref, ty_ref, vis_ref, conf_ref,
                 ox_ref, oy_ref, ovis_ref, oconf_ref, *, sx, sy, thr):
    # qt/qx/qy: (B, bn) f32;  tx/ty/vis/conf & outputs: (B, T, bn) f32
    qt = qt_ref[...].astype(jnp.int32)[:, None, :]      # trunc-to-zero ~ .long()
    t_idx = lax.broadcasted_iota(jnp.int32, tx_ref.shape, 1)     # (B, T, bn)
    is_q = t_idx == qt
    ox_ref[...] = jnp.where(is_q, qx_ref[...][:, None, :], tx_ref[...]) * sx
    oy_ref[...] = jnp.where(is_q, qy_ref[...][:, None, :], ty_ref[...]) * sy
    ovis_ref[...] = jnp.where(is_q, 1.0,
                              (vis_ref[...] > thr).astype(jnp.float32))
    oconf_ref[...] = conf_ref[...]


def _choose_bn(n):
    if n % 128 == 0:
        for cand in (512, 256, 128):
            if n % cand == 0:
                return cand
    # TODO(synk): N not a multiple of 128 keeps a single full-width lane block.
    return n


def postprocess(traj, vis, conf, queries, sx, sy, thr=0.9):
    """traj (B,T,N,2), vis/conf (B,T,N), queries (B,>=N,3) in interp space."""
    B, T, N, _ = traj.shape
    q = queries[:, :N, :].astype(jnp.float32)
    qt, qx, qy = q[..., 0], q[..., 1], q[..., 2]          # (B, N) lane-dense
    tx, ty = traj[..., 0], traj[..., 1]                   # (B, T, N)
    vis_f = vis.astype(jnp.float32)
    conf_f = conf.astype(jnp.float32)

    bn = _choose_bn(N)
    grid = (N // bn,)
    spec_q = pl.BlockSpec((B, bn), lambda g: (0, g))
    spec_m = pl.BlockSpec((B, T, bn), lambda g: (0, 0, g))

    kernel = functools.partial(_post_kernel, sx=float(sx), sy=float(sy),
                               thr=float(thr))
    out_sds = jax.ShapeDtypeStruct((B, T, N), jnp.float32)
    ox, oy, ovis, oconf = pl.pallas_call(
        kernel,
        out_shape=(out_sds, out_sds, out_sds, out_sds),
        grid=grid,
        in_specs=[spec_q, spec_q, spec_q, spec_m, spec_m, spec_m, spec_m],
        out_specs=(spec_m, spec_m, spec_m, spec_m),
        compiler_params=pltpu.CompilerParams(
            dimension_semantics=("parallel",),
            vmem_limit_bytes=_VMEM_LIMIT),
    )(qt, qx, qy, tx, ty, vis_f, conf_f)

    traj_out = jnp.stack([ox, oy], axis=-1)               # (B, T, N, 2)
    vis_out = ovis > 0.5
    return traj_out, vis_out, oconf


# ---------------------------------------------------------------------------
# Glue (plain JAX): support grid, synthetic stand-in for the tracking network
# ---------------------------------------------------------------------------
def get_points_on_a_grid(size, extent):
    H, W = extent
    margin = W / 64.0
    gy = jnp.linspace(margin, H - margin, size)
    gx = jnp.linspace(margin, W - margin, size)
    yy, xx = jnp.meshgrid(gy, gx, indexing="ij")
    return jnp.stack([xx, yy], axis=-1).reshape(1, -1, 2).astype(jnp.float32)


def _stub_track_model(video_resized, queries, key):
    # TODO(synk): self.model is an external tracking network supplied at
    # construction time; it is not part of Predictor2D, so a deterministic
    # synthetic stub (same output shapes/dtypes) is used here.
    B, T, C, iH, iW = video_resized.shape
    Ntot = queries.shape[1]
    w = jax.random.normal(key, (C, 2), dtype=jnp.float32) * 0.05
    feat = video_resized.mean(axis=(3, 4))                        # (B, T, C)
    drift = feat @ w                                              # (B, T, 2)
    t = jnp.arange(T, dtype=jnp.float32)[None, :, None, None]
    coords = queries[:, None, :, 1:3] + drift[:, :, None, :] * t  # (B,T,N,2)
    vis = jax.nn.sigmoid(
        2.0 + 0.3 * jnp.arange(T, dtype=jnp.float32)[None, :, None]
        - 0.05 * queries[:, None, :, 0])                          # (B,T,N)
    conf = jnp.full((B, T, Ntot), 0.8, dtype=jnp.float32)
    return coords.astype(jnp.float32), vis.astype(jnp.float32), conf


# ---------------------------------------------------------------------------
# Predictor2D
# ---------------------------------------------------------------------------
class Predictor2DPallas:
    def __init__(self, interp_shape=(24, 32), key=jax.random.PRNGKey(42)):
        self.interp_shape = interp_shape        # model.model_resolution
        self.n_iters = 6
        self.support_grid_size = 6
        self._model_key = key                   # deterministic stub weights

    def __call__(self, video, queries=None, segm_mask=None, grid_size=0,
                 grid_query_frame=0, backward_tracking=False,
                 scale_to_origin=True):
        # TODO(synk): dense path (_compute_dense_tracks) loops the external
        # tracking network over grid offsets; not supported in this port.
        assert queries is not None, "dense path not supported in this port"
        return self._compute_sparse_tracks(
            video, queries,
            add_support_grid=(grid_size == 0 or segm_mask is not None),
            scale_to_origin=scale_to_origin)

    def _compute_sparse_tracks(self, video, queries, add_support_grid=True,
                               scale_to_origin=True):
        B, T, C, H, W = video.shape
        iH, iW = self.interp_shape

        # F.interpolate(..., mode='bilinear', align_corners=True)  [Pallas]
        video_rs = bilinear_resize(video.reshape(B * T * C, H, W), (iH, iW))
        video_rs = video_rs.reshape(B, T, C, iH, iW)

        # queries[:, :, 1:] *= [(iW-1)/(W-1), (iH-1)/(H-1)]
        scale = jnp.array([1.0, (iW - 1) / (W - 1), (iH - 1) / (H - 1)],
                          jnp.float32)
        queries = queries.astype(jnp.float32) * scale[None, None, :]

        if add_support_grid:
            grid_pts = get_points_on_a_grid(self.support_grid_size, (iH, iW))
            grid_pts = jnp.concatenate(
                [jnp.zeros_like(grid_pts[:, :, :1]), grid_pts], axis=2)
            grid_pts = jnp.tile(grid_pts, (B, 1, 1))
            queries_full = jnp.concatenate([queries, grid_pts], axis=1)
        else:
            queries_full = queries

        coords, vis, conf = _stub_track_model(video_rs, queries_full,
                                              self._model_key)
        # TODO(synk): backward_tracking path skipped (it re-runs the external
        # model on the reversed video).

        if add_support_grid:
            n_sup = self.support_grid_size ** 2
            coords = coords[:, :, :-n_sup]
            vis = vis[:, :, :-n_sup]
            conf = conf[:, :, :-n_sup]

        sx = (W - 1) / float(iW - 1) if scale_to_origin else 1.0
        sy = (H - 1) / float(iH - 1) if scale_to_origin else 1.0
        traj_e, vis_e, conf_e = postprocess(coords, vis, conf, queries_full,
                                            sx, sy, thr=0.9)
        return {"trajs_uv": traj_e, "vis": vis_e, "conf": conf_e}


# ---------------------------------------------------------------------------
if __name__ == "__main__":
    key = jax.random.PRNGKey(0)
    k1, k2, k3 = jax.random.split(key, 3)

    B, T, C, H, W = 2, 8, 3, 16, 16
    N = 8
    iH, iW = 24, 32
    video = jax.random.uniform(k1, (B, T, C, H, W), jnp.float32)
    q_t = jax.random.randint(k2, (B, N, 1), 0, T).astype(jnp.float32)
    q_xy = jax.random.uniform(k3, (B, N, 2), jnp.float32) * jnp.array(
        [W - 1, H - 1], jnp.float32)
    queries = jnp.concatenate([q_t, q_xy], axis=-1)     # (B, N, 3) [t, x, y]

    # Sanity check: Pallas resize vs numpy separable reference on one image.
    vr = bilinear_resize(video.reshape(B * T * C, H, W), (iH, iW))
    jax.block_until_ready(vr)
    wy_np = _interp_matrix_np(iH, H)
    wx_np = _interp_matrix_np(iW, W)
    ref0 = wy_np @ np.asarray(video[0, 0, 0]) @ wx_np.T
    np.testing.assert_allclose(np.asarray(vr[0]), ref0, atol=1e-2, rtol=1e-2)

    model = Predictor2DPallas(interp_shape=(iH, iW))
    out = model(video, queries=queries, grid_size=0)
    jax.block_until_ready(out)

    assert out["trajs_uv"].shape == (B, T, N, 2)
    assert out["vis"].shape == (B, T, N) and out["vis"].dtype == jnp.bool_
    assert out["conf"].shape == (B, T, N)
    print("KERNEL_OK")
</pallas_src>

<mosaic_0001>
module attributes {stable_mosaic.version = 11 : i64} {
  func.func @_resize_kron_kernel(%arg0: i32, %arg1: memref<256x768xf32, #tpu.memory_space<vmem>>, %arg2: memref<8x256xf32, #tpu.memory_space<vmem>>, %arg3: memref<8x768xf32, #tpu.memory_space<vmem>>) attributes {dimension_semantics = [#tpu.dimension_semantics<parallel>], iteration_bounds = array<i64: 6>, scalar_prefetch = 0 : i64, scratch_operands = 0 : i64, tpu.core_type = #tpu.core_type<tc>, window_params = [{pipeline_mode = #tpu.pipeline_mode<synchronous>, transform_indices = @transform_0, window_bounds = array<i64: 256, 768>}, {transform_indices = @transform_1, window_bounds = array<i64: 8, 256>}, {transform_indices = @transform_2, window_bounds = array<i64: 8, 768>}]} {
    %c0 = arith.constant 0 : index
    %c0_0 = arith.constant 0 : index
    %0 = vector.load %arg2[%c0, %c0_0] : memref<8x256xf32, #tpu.memory_space<vmem>>, vector<8x256xf32>
    %c0_1 = arith.constant 0 : index
    %c0_2 = arith.constant 0 : index
    %1 = vector.load %arg1[%c0_1, %c0_2] : memref<256x768xf32, #tpu.memory_space<vmem>>, vector<256x768xf32>
    %cst = arith.constant dense<0.000000e+00> : vector<8x768xf32>
    %2 = tpu.matmul %0, %1, %cst {dimension_numbers = #tpu.dot_dimension_numbers<[1], [0], [0], [1], [0, 0, 1, 1], [], []>} : vector<8x256xf32>, vector<256x768xf32>, vector<8x768xf32> -> vector<8x768xf32>
    %c0_3 = arith.constant 0 : index
    %c0_4 = arith.constant 0 : index
    %3 = vector.load %arg3[%c0_3, %c0_4] : memref<8x768xf32, #tpu.memory_space<vmem>>, vector<8x768xf32>
    tpu.vector_store %arg3[%c0_3, %c0_4], %2 {strides = array<i32>} : memref<8x768xf32, #tpu.memory_space<vmem>>, vector<8x768xf32>,
    return
  }
  func.func @transform_0(%arg0: i32) -> (i32, i32) {
    %c0_i32 = arith.constant 0 : i32
    %c0_i32_0 = arith.constant 0 : i32
    %c0_i32_1 = arith.constant 0 : i32
    return %c0_i32, %c0_i32_0 : i32, i32
  }
  func.func @transform_1(%arg0: i32) -> (i32, i32) {
    %c0_i32 = arith.constant 0 : i32
    %c0_i32_0 = arith.constant 0 : i32
    return %arg0, %c0_i32 : i32, i32
  }
  func.func @transform_2(%arg0: i32) -> (i32, i32) {
    %c0_i32 = arith.constant 0 : i32
    %c0_i32_0 = arith.constant 0 : i32
    return %arg0, %c0_i32 : i32, i32
  }
}

</mosaic_0001>

<bundles_post_ra>
// kernel: tpu_custom_call.1
= control target key start
LH: loop header
LB: loop body
LE: loop exit
PB: predicated region body
PF: predicated region fallthrough
CT: control target
= control target key end

     0   :  { %7 = vsyncpa [#allocation3], 0  ;;  %s1304_s0 = inlined_call_operand.hbm [shape: f32[256,768], index: 0, kind: input, shape index: {}]   ;;  %s1305_s1 = inlined_call_operand.hbm [shape: f32[48,256], index: 1, kind: input, shape index: {}]   ;;  %s1306_s2 = inlined_call_operand.hbm [shape: f32[48,768], index: 2, kind: output, shape index: {}]  }
   0x1   :  { %8 = vsyncpa [#allocation6], 0 }
   0x2   :  { %10 = vsyncpa [#allocation6 + $0x1], 0 }
   0x3   :  { %11 = vsyncpa [#allocation4], 0 }
   0x4   :  { %13 = vsyncpa [#allocation4 + $0x1], 0  ;;  %s1102_s9 = smov 0   ;;  %s1104_s10 = smov 0  }
   0x5   :  { %s1106_s11 = smov 0   ;;  %s1108_s12 = smov 0  }
   0x6 LB: > { %s1123_s13 = sadd.s32 4294967295, %s1080_s12   ;;  %s685_s14 = sadd.s32 4294967294, %s1080_s12   ;;  %s1080_s12 = sphi %s1108_s12, %s1325_s12   ;;  %s1076_s11 = sphi %s1106_s11, %s1324_s11   ;;  %s1072_s10 = sphi %s1104_s10, %s1323_s10   ;;  %s1068_s9 = sphi %s1102_s9, %s1322_s9  }
   0x7   : > { %p60_p0 = scmp.ne.s32.totalorder %s1072_s10, %s1068_s9  ;;  %p1307_p1 = scmp.eq.s32.totalorder %s1123_s13, 0 }
   0x8   : > { %p90_p3 = scmp.eq.s32.totalorder %s685_s14, 5  ;;  %p686_p5 = scmp.ge.s32.totalorder %s1080_s12, 1 }
   0x9   : > { %p1132_p4 = por %p1307_p1, %p60_p0  ;;  %p97_p7 = scmp.lt.s32.totalorder %s1080_s12, 7 }
   0xa   : > { %p1137_p6 = por %p90_p3, %p60_p0  ;;  %s1082_s18 = smov [#allocation2]  }
   0xb   : > { %s1310_s15 = scalar_select %p1132_p4, 1, 0 }
   0xc   : > { %s1311_s16 = scalar_select %p1137_p6, 1, 0 }
   0xd   : > { %p1142_p8 = pnand %p686_p5, %p97_p7  ;;  %s109_s19 = sshll.u32 %s1082_s18, 4  ;;  %s110_s19 = int_to_ptr.vmem [resolvable:$true] %s109_s19 }
   0xe   : > { %s1155_s21 = sadd.s32 1, %s1080_s12   ;;  %s47_s22 = sadd.s32 1, %s1076_s11 }
   0xf   : > { %s1312_s17 = scalar_select %p1142_p8, 1, 0 }
  0x10   : > { %p901_p9 = pneg %p1142_p8  ;;  %s44_s23 = ssub.s32 %s1080_s12, %s1155_s21 }
  0x11   : > { %s952_s26 = scalar_lea.hbm %s1304_s0, 24576 }
  0x12   : > { %p1150_p10 = pnand %p901_p9, %p1307_p1  ;;  %p953_p11 = scmp.ne.s32.totalorder %s1304_s0, %s952_s26 }
  0x13   : > { %p959_p3 = scmp.lt.u32.totalorder %s952_s26, %s1304_s0 }
  0x14   : > { %p954_p12 = pneg %p1150_p10 }
  0x16   : > { %p955_p13 = pnand %p954_p12, %p953_p11 }
  0x18   : > { %p956_p0 = pneg %p955_p13 }
  0x1a   : > { %p961_p5 = pnand %p959_p3, %p956_p0 }
  0x1c   : > { %964 = shalt.err (!%p961_p5)
}
  0x1d   : > { %s965_s3 = scalar_lea.vmem %s110_s19, 24576  ;;  %p973_p2 = scmp.lt.s32.totalorder %s110_s19, %s110_s19 }
  0x1e   : > { %p966_p7 = scmp.ne.s32.totalorder %s110_s19, %s965_s3  ;;  %p974_p6 = scmp.lt.s32.totalorder %s965_s3, %s965_s3 }
  0x20   : > { %p968_p9 = pnand %p966_p7, %p954_p12  ;;  %p975_p4 = por %p974_p6, %p973_p2 }
  0x22   : > { %p969_p1 = pneg %p968_p9 }
  0x24   : > { %p976_p8 = pnand %p975_p4, %p969_p1 }
  0x26   : > { %979 = shalt.err (!%p976_p8)
}
  0x27   : > { %s1083_s4 = smov 768   ;;  %s1084_s5 = smov 48  }
  0x28   : > { %904 = dma.hbm_to_vmem [thread:$0]  (!%p1150_p10), %s1304_s0, 24576, %s110_s19, [#allocation3], %s1083_s4, %s1083_s4, %s1084_s5  }
  0x29   : > { %p45_p11 = scmp.eq.s32.totalorder %s44_s23, 0  ;;  %p54_p2 = scmp.ne.s32.totalorder %s1076_s11, %s1072_s10 }
  0x2a   : > { %p55_p1 = scmp.eq.s32.totalorder %s1080_s12, 0  ;;  %p914_p4 = scmp.lt.s32.totalorder %s1080_s12, 6 }
  0x2b   : > { %s1181_s8 = scalar_select %p45_p11, %s1076_s11, %s47_s22  }
  0x2c   : > { %p56_p6 = por %p55_p1, %p54_p2  ;;  %p1314_p8 = scmp.eq.s32.totalorder %s1123_s13, 5 }
  0x2d   : > { %s123_s18 = sand.u32 1, %s1076_s11   ;;  %s698_s24 = sshll.u32 %s1080_s12, 8 }
  0x2e   : > { %p1185_p12 = por %p1314_p8, %p54_p2  ;;  %s689_s25 = sshll.u32 %s123_s18, 4 }
  0x2f   : > { %s1194_s27 = scalar_lea.hbm %s1305_s1, %s698_s24  ;;  %s127_s19 = scalar_lea.vmem [#allocation5], %s689_s25 }
  0x30   : > { %s135_s22 = sshll.u32 %s127_s19, 4  ;;  %p1196_p10 = pnand %p914_p4, %p56_p6  ;;  %s1200_s22 = int_to_ptr.vmem [resolvable:$true] %s135_s22 }
  0x31   : > { %s124_s28 = scalar_lea.sflag [#allocation6], %s123_s18  ;;  %s980_s29 = scalar_lea.hbm %s1194_s27, 256 }
  0x32   : > { %p981_p13 = scmp.ne.s32.totalorder %s1194_s27, %s980_s29  ;;  %p982_p0 = pneg %p1196_p10 }
  0x33   : > { %s985_s4 = scalar_lea.hbm %s1305_s1, 1536  ;;  %p986_p7 = scmp.lt.u32.totalorder %s1194_s27, %s1305_s1 }
  0x34   : > { %p983_p3 = pnand %p982_p0, %p981_p13  ;;  %p987_p9 = scmp.lt.u32.totalorder %s985_s4, %s980_s29 }
  0x35   : > { %p989_p2 = scmp.lt.u32.totalorder %s980_s29, %s1194_s27 }
  0x36   : > { %p984_p5 = pneg %p983_p3  ;;  %p988_p11 = por %p987_p9, %p986_p7 }
  0x38   : > { %p990_p1 = por %p989_p2, %p988_p11 }
  0x3a   : > { %p991_p4 = pnand %p990_p1, %p984_p5 }
  0x3c   : > { %994 = shalt.err (!%p991_p4)
}
  0x3d   : > { %s995_s7 = scalar_lea.vmem %s1200_s22, 256  ;;  %s1085_s18 = smov [#allocation5]  }
  0x3e   : > { %p996_p6 = scmp.ne.s32.totalorder %s1200_s22, %s995_s7  ;;  %s1000_s24 = sshll.u32 %s1085_s18, 4  ;;  %s1001_s24 = int_to_ptr.vmem [resolvable:$false] %s1000_s24 }
  0x3f   : > { %s1002_s25 = scalar_lea.vmem %s1001_s24, 512  ;;  %p1003_p3 = scmp.lt.s32.totalorder %s1200_s22, %s1001_s24 }
  0x40   : > { %p998_p8 = pnand %p996_p6, %p982_p0  ;;  %p1004_p7 = scmp.lt.s32.totalorder %s1002_s25, %s995_s7 }
  0x42   : > { %p999_p13 = pneg %p998_p8  ;;  %p1005_p9 = por %p1004_p7, %p1003_p3 }
  0x44   : > { %p1006_p11 = pnand %p1005_p9, %p999_p13 }
  0x46   : > { %1009 = shalt.err (!%p1006_p11)
}
  0x47   : > { %908 = dma.hbm_to_vmem [thread:$0]  (!%p1196_p10), %s1194_s27, 256, %s1200_s22, %s124_s28  }
  0x48   : > { %p1317_p5 = scmp.ne.s32.totalorder %s1312_s17, 0 }
  0x49   : > { %p1318_p0 = scmp.eq.s32.totalorder (!%p1317_p5), %s1123_s13, 0 }
  0x4a   : > { %144 = sbr.rel (%p1317_p5) target bundleno = 444 (0x1bc), region = 28 }
  0x51   : > { %1055 = dma.done.wait (%p1318_p0), [#allocation3], 24576   ;;  %p1319_p2 = pmov %p1318_p0 }
  0x52   : > { %s1234_s20 = sand.u32 1, %s1072_s10   ;;  %p1320_p10 = scmp.ne.s32.totalorder %s1310_s15, 0 }
  0x53   : > { %1057 = vsyncadd (%p1319_p2), [#allocation3], 4294942720  ;;  %s694_s26 = sshll.u32 %s1234_s20, 4  ;;  %s151_s19 = scalar_lea.sflag [#allocation6], %s1234_s20 }
  0x54   : > { %s1238_s23 = scalar_lea.vmem [#allocation5], %s694_s26 }
  0x55   : > { %1059 = dma.done.wait (%p1320_p10), %s151_s19, 256  }
  0x56   : > { %1061 = vsyncadd (%p1320_p10), %s151_s19, 4294967040  ;;  %v178_v0 = vld [vmem:[#allocation2 + $0x8] sm:$0xff]  ;;  %v184_v1 = vld [vmem:[#allocation2 + $0x38] sm:$0xff]  ;;  %s891_s15 = smul.u32 48, %s1234_s20  ;;  %s589_s3 = scalar_lea.sflag [#allocation4], %s1234_s20 }
  0x57   : > { %v177_v2 = vld [vmem:[#allocation2] sm:$0xff]  ;;  %v699_v3 = vpack.c.bf16 %v184_v1, %v178_v0  ;;  %v183_v4 = vld [vmem:[#allocation2 + $0x30] sm:$0xff]  ;;  %v190_v5 = vld [vmem:[#allocation2 + $0x68] sm:$0xff]  ;;  %s892_s27 = smul.u32 768, %s1123_s13  ;;  %s1086_s13 = smov [#allocation7]  }
  0x58   : > { %v196_v6 = vld [vmem:[#allocation2 + $0x98] sm:$0xff]  ;;  %v701_v7 = vpack.c.bf16 %v183_v4, %v177_v2  ;;  %v189_v9 = vld [vmem:[#allocation2 + $0x60] sm:$0xff]  ;;  %v195_v10 = vld [vmem:[#allocation2 + $0x90] sm:$0xff]  ;;  %s174_s17 = scalar_lea.vmem [#allocation7], %s891_s15  ;;  %s1014_s5 = sshll.u32 %s1086_s13, 4  ;;  %s1015_s5 = int_to_ptr.vmem [resolvable:$false] %s1014_s5 }
  0x59   : > { %v703_v8 = vpack.c.bf16 %v196_v6, %v190_v5  ;;  %v202_v11 = vld [vmem:[#allocation2 + $0xc8] sm:$0xff]  ;;  %700 = vmatprep.subr.bf16.mxu0 %v699_v3  ;;  %v208_v12 = vld [vmem:[#allocation2 + $0xf8] sm:$0xff]  ;;  %v705_v13 = vpack.c.bf16 %v195_v10, %v189_v9  ;;  %v201_v15 = vld [vmem:[#allocation2 + $0xc0] sm:$0xff]  ;;  %s603_s22 = sshll.u32 %s174_s17, 4  ;;  %s1261_s30 = scalar_lea.hbm %s1306_s2, %s892_s27  ;;  %s1263_s22 = int_to_ptr.vmem [resolvable:$true] %s603_s22 }
  0x5a   : > { %702 = vmatpush1.bf16.msra.mxu0 %v701_v7  ;;  %v707_v14 = vpack.c.bf16 %v208_v12, %v202_v11  ;;  %v207_v16 = vld [vmem:[#allocation2 + $0xf0] sm:$0xff]  ;;  %v214_v17 = vld [vmem:[#allocation2 + $0x128] sm:$0xff]  ;;  %v220_v18 = vld [vmem:[#allocation2 + $0x158] sm:$0xff]  ;;  %s1010_s4 = scalar_lea.vmem %s1263_s22, 768  ;;  %s1016_s6 = scalar_lea.vmem %s1015_s5, 1536 }
  0x5b   : > { %704 = vmatprep.subr.bf16.mxu0 %v703_v8  ;;  %v709_v19 = vpack.c.bf16 %v207_v16, %v201_v15  ;;  %v711_v20 = vpack.c.bf16 %v220_v18, %v214_v17  ;;  %v213_v21 = vld [vmem:[#allocation2 + $0x120] sm:$0xff]  ;;  %v219_v22 = vld [vmem:[#allocation2 + $0x150] sm:$0xff]  ;;  %v226_v23 = vld [vmem:[#allocation2 + $0x188] sm:$0xff]  ;;  %p1011_p1 = scmp.ne.s32.totalorder %s1263_s22, %s1010_s4  ;;  %p1017_p8 = scmp.lt.s32.totalorder %s1263_s22, %s1015_s5 }
  0x5c   : > { %v232_v24 = vld [vmem:[#allocation2 + $0x1b8] sm:$0xff]  ;;  %v713_v25 = vpack.c.bf16 %v219_v22, %v213_v21  ;;  %v225_v27 = vld [vmem:[#allocation2 + $0x180] sm:$0xff]  ;;  %v231_v28 = vld [vmem:[#allocation2 + $0x1b0] sm:$0xff]  ;;  %p1018_p13 = scmp.lt.s32.totalorder %s1016_s6, %s1010_s4 }
  0x5d   : > { %v715_v26 = vpack.c.bf16 %v232_v24, %v226_v23  ;;  %v238_v29 = vld [vmem:[#allocation2 + $0x1e8] sm:$0xff]  ;;  %v244_v30 = vld [vmem:[#allocation2 + $0x218] sm:$0xff]  ;;  %v717_v31 = vpack.c.bf16 %v231_v28, %v225_v27  ;;  %v237_v33 = vld [vmem:[#allocation2 + $0x1e0] sm:$0xff]  ;;  %p1012_p4 = pnand %p1011_p1, %p1185_p12 }
  0x5e   : > { %706 = vmatpush1.bf16.msra.mxu0 %v705_v13  ;;  %v719_v32 = vpack.c.bf16 %v244_v30, %v238_v29  ;;  %v243_v34 = vld [vmem:[#allocation2 + $0x210] sm:$0xff]  ;;  %v250_v35 = vld [vmem:[#allocation2 + $0x248] sm:$0xff]  ;;  %v256_v36 = vld [vmem:[#allocation2 + $0x278] sm:$0xff]  ;;  %p1019_p3 = por %p1018_p13, %p1017_p8 }
  0x5f   : > { %708 = vmatprep.subr.bf16.mxu0 %v707_v14  ;;  %v721_v37 = vpack.c.bf16 %v243_v34, %v237_v33  ;;  %v249_v38 = vld [vmem:[#allocation2 + $0x240] sm:$0xff]  ;;  %v255_v39 = vld [vmem:[#allocation2 + $0x270] sm:$0xff]  ;;  %v723_v40 = vpack.c.bf16 %v256_v36, %v250_v35  ;;  %v262_v41 = vld [vmem:[#allocation2 + $0x2a8] sm:$0xff]  ;;  %p1013_p6 = pneg %p1012_p4 }
  0x60   : > { %v1245_v42 = vld [vmem:[%s1238_s23 + $0x8] sm:$0xff]  ;;  %v179_v46 = vld [vmem:[#allocation2 + $0x10] sm:$0xff]  ;;  %v185_v48 = vld [vmem:[#allocation2 + $0x40] sm:$0xff]  ;;  %v725_v49 = vpack.c.bf16 %v255_v39, %v249_v38 }
  0x61   : > { %v180_v43 = vld [vmem:[#allocation2 + $0x18] sm:$0xff]  ;;  %433 = vmatprep.mubr.f32.mxu0 %v1245_v42  ;;  %v186_v45 = vld [vmem:[#allocation2 + $0x48] sm:$0xff]  ;;  %504 = vmatprep.mubr.f32.mxu1 %v1245_v42  ;;  %v261_v50 = vld [vmem:[#allocation2 + $0x2a0] sm:$0xff]  ;;  %v765_v52 = vpack.c.bf16 %v185_v48, %v179_v46  ;;  %p1020_p7 = pnand %p1019_p3, %p1013_p6 }
  0x62   : > { %710 = vmatpush1.bf16.msra.mxu0 %v709_v19  ;;  %v268_v44 = vld [vmem:[#allocation2 + $0x2d8] sm:$0xff]  ;;  %v763_v47 = vpack.c.bf16 %v186_v45, %v180_v43  ;;  %v267_v51 = vld [vmem:[#allocation2 + $0x2d0] sm:$0xff]  ;;  %v198_v55 = vld [vmem:[#allocation2 + $0xa8] sm:$0xff] }
  0x63   : > { %712 = vmatprep.subr.bf16.mxu0 %v711_v20  ;;  %v192_v53 = vld [vmem:[#allocation2 + $0x78] sm:$0xff]  ;;  %v727_v54 = vpack.c.bf16 %v268_v44, %v262_v41  ;;  %v191_v56 = vld [vmem:[#allocation2 + $0x70] sm:$0xff]  ;;  %v197_v57 = vld [vmem:[#allocation2 + $0xa0] sm:$0xff]  ;;  %v729_v0 = vpack.c.bf16 %v267_v51, %v261_v50 }
  0x64   : > { %764 = vmatprep.subr.bf16.mxu1 %v763_v47  ;;  %v274_v58 = vld [vmem:[#allocation2 + $0x308] sm:$0xff]  ;;  %v280_v59 = vld [vmem:[#allocation2 + $0x338] sm:$0xff]  ;;  %v767_v60 = vpack.c.bf16 %v198_v55, %v192_v53  ;;  %v769_v61 = vpack.c.bf16 %v197_v57, %v191_v56  ;;  %v203_v2 = vld [vmem:[#allocation2 + $0xd0] sm:$0xff] }
  0x65   : > { %766 = vmatpush1.bf16.msra.mxu1 %v765_v52  ;;  %v204_v62 = vld [vmem:[#allocation2 + $0xd8] sm:$0xff]  ;;  %v210_v63 = vld [vmem:[#allocation2 + $0x108] sm:$0xff]  ;;  %v209_v3 = vld [vmem:[#allocation2 + $0x100] sm:$0xff]  ;;  %v731_v4 = vpack.c.bf16 %v280_v59, %v274_v58 }
  0x66   : > { %714 = vmatpush1.bf16.msra.mxu0 %v713_v25  ;;  %768 = vmatprep.subr.bf16.mxu1 %v767_v60  ;;  %v771_v1 = vpack.c.bf16 %v210_v63, %v204_v62  ;;  %v273_v5 = vld [vmem:[#allocation2 + $0x300] sm:$0xff]  ;;  %v279_v6 = vld [vmem:[#allocation2 + $0x330] sm:$0xff]  ;;  %v286_v7 = vld [vmem:[#allocation2 + $0x368] sm:$0xff]  ;;  %v773_v9 = vpack.c.bf16 %v209_v3, %v203_v2 }
  0x67   : > { %716 = vmatprep.subr.bf16.mxu0 %v715_v26  ;;  %v292_v8 = vld [vmem:[#allocation2 + $0x398] sm:$0xff]  ;;  %v222_v11 = vld [vmem:[#allocation2 + $0x168] sm:$0xff]  ;;  %v215_v13 = vld [vmem:[#allocation2 + $0x130] sm:$0xff]  ;;  %v733_v15 = vpack.c.bf16 %v279_v6, %v273_v5 }
  0x68   : > { %v216_v10 = vld [vmem:[#allocation2 + $0x138] sm:$0xff]  ;;  %v221_v14 = vld [vmem:[#allocation2 + $0x160] sm:$0xff]  ;;  %v735_v17 = vpack.c.bf16 %v292_v8, %v286_v7  ;;  %v291_v19 = vld [vmem:[#allocation2 + $0x390] sm:$0xff] }
  0x69   : > { %770 = vmatpush1.bf16.msra.mxu1 %v769_v61  ;;  %v775_v12 = vpack.c.bf16 %v222_v11, %v216_v10  ;;  %v228_v16 = vld [vmem:[#allocation2 + $0x198] sm:$0xff]  ;;  %v285_v18 = vld [vmem:[#allocation2 + $0x360] sm:$0xff]  ;;  %v234_v20 = vld [vmem:[#allocation2 + $0x1c8] sm:$0xff]  ;;  %v777_v23 = vpack.c.bf16 %v221_v14, %v215_v13 }
  0x6a   : > { %718 = vmatpush1.bf16.msra.mxu0 %v717_v31  ;;  %772 = vmatprep.subr.bf16.mxu1 %v771_v1  ;;  %v298_v21 = vld [vmem:[#allocation2 + $0x3c8] sm:$0xff]  ;;  %v304_v22 = vld [vmem:[#allocation2 + $0x3f8] sm:$0xff]  ;;  %v779_v24 = vpack.c.bf16 %v234_v20, %v228_v16  ;;  %v227_v25 = vld [vmem:[#allocation2 + $0x190] sm:$0xff]  ;;  %v737_v27 = vpack.c.bf16 %v291_v19, %v285_v18 }
  0x6b   : > { %720 = vmatprep.subr.bf16.mxu0 %v719_v32  ;;  %v233_v26 = vld [vmem:[#allocation2 + $0x1c0] sm:$0xff]  ;;  %v240_v28 = vld [vmem:[#allocation2 + $0x1f8] sm:$0xff]  ;;  %v246_v29 = vld [vmem:[#allocation2 + $0x228] sm:$0xff]  ;;  %v739_v30 = vpack.c.bf16 %v304_v22, %v298_v21 }
  0x6c   : > { %v297_v31 = vld [vmem:[#allocation2 + $0x3c0] sm:$0xff]  ;;  %v303_v32 = vld [vmem:[#allocation2 + $0x3f0] sm:$0xff]  ;;  %v310_v33 = vld [vmem:[#allocation2 + $0x428] sm:$0xff]  ;;  %v781_v35 = vpack.c.bf16 %v233_v26, %v227_v25  ;;  %v783_v36 = vpack.c.bf16 %v246_v29, %v240_v28 }
  0x6d   : > { %774 = vmatpush1.bf16.msra.mxu1 %v773_v9  ;;  %v316_v34 = vld [vmem:[#allocation2 + $0x458] sm:$0xff]  ;;  %v245_v38 = vld [vmem:[#allocation2 + $0x220] sm:$0xff]  ;;  %v741_v39 = vpack.c.bf16 %v303_v32, %v297_v31  ;;  %v258_v41 = vld [vmem:[#allocation2 + $0x288] sm:$0xff] }
  0x6e   : > { %722 = vmatpush1.bf16.msra.mxu0 %v721_v37  ;;  %776 = vmatprep.subr.bf16.mxu1 %v775_v12  ;;  %v239_v37 = vld [vmem:[#allocation2 + $0x1f0] sm:$0xff]  ;;  %v743_v43 = vpack.c.bf16 %v316_v34, %v310_v33  ;;  %v309_v44 = vld [vmem:[#allocation2 + $0x420] sm:$0xff]  ;;  %v322_v46 = vld [vmem:[#allocation2 + $0x488] sm:$0xff] }
  0x6f   : > { %724 = vmatprep.subr.bf16.mxu0 %v723_v40  ;;  %v252_v40 = vld [vmem:[#allocation2 + $0x258] sm:$0xff]  ;;  %v315_v45 = vld [vmem:[#allocation2 + $0x450] sm:$0xff]  ;;  %v785_v48 = vpack.c.bf16 %v245_v38, %v239_v37  ;;  %v257_v51 = vld [vmem:[#allocation2 + $0x280] sm:$0xff] }
  0x70   : > { %v328_v47 = vld [vmem:[#allocation2 + $0x4b8] sm:$0xff]  ;;  %v251_v50 = vld [vmem:[#allocation2 + $0x250] sm:$0xff]  ;;  %v745_v52 = vpack.c.bf16 %v315_v45, %v309_v44  ;;  %v321_v56 = vld [vmem:[#allocation2 + $0x480] sm:$0xff] }
  0x71   : > { %778 = vmatpush1.bf16.msra.mxu1 %v777_v23  ;;  %v264_v53 = vld [vmem:[#allocation2 + $0x2b8] sm:$0xff]  ;;  %v747_v55 = vpack.c.bf16 %v328_v47, %v322_v46  ;;  %v327_v57 = vld [vmem:[#allocation2 + $0x4b0] sm:$0xff]  ;;  %v334_v58 = vld [vmem:[#allocation2 + $0x4e8] sm:$0xff]  ;;  %v789_v60 = vpack.c.bf16 %v257_v51, %v251_v50 }
  0x72   : > { %726 = vmatpush1.bf16.msra.mxu0 %v725_v49  ;;  %780 = vmatprep.subr.bf16.mxu1 %v779_v24  ;;  %v787_v49 = vpack.c.bf16 %v258_v41, %v252_v40  ;;  %v340_v59 = vld [vmem:[#allocation2 + $0x518] sm:$0xff]  ;;  %v263_v62 = vld [vmem:[#allocation2 + $0x2b0] sm:$0xff]  ;;  %v269_v63 = vld [vmem:[#allocation2 + $0x2e0] sm:$0xff] }
  0x73   : > { %728 = vmatprep.subr.bf16.mxu0 %v727_v54  ;;  %v270_v54 = vld [vmem:[#allocation2 + $0x2e8] sm:$0xff]  ;;  %v276_v1 = vld [vmem:[#allocation2 + $0x318] sm:$0xff]  ;;  %v751_v3 = vpack.c.bf16 %v340_v59, %v334_v58  ;;  %v339_v5 = vld [vmem:[#allocation2 + $0x510] sm:$0xff]  ;;  %v793_v8 = vpack.c.bf16 %v269_v63, %v263_v62 }
  0x74   : > { %v791_v61 = vpack.c.bf16 %v270_v54, %v264_v53  ;;  %v282_v2 = vld [vmem:[#allocation2 + $0x348] sm:$0xff]  ;;  %v352_v7 = vld [vmem:[#allocation2 + $0x578] sm:$0xff]  ;;  %v275_v10 = vld [vmem:[#allocation2 + $0x310] sm:$0xff] }
  0x75   : > { %782 = vmatpush1.bf16.msra.mxu1 %v781_v35  ;;  %v346_v6 = vld [vmem:[#allocation2 + $0x548] sm:$0xff]  ;;  %v795_v9 = vpack.c.bf16 %v282_v2, %v276_v1  ;;  %v281_v11 = vld [vmem:[#allocation2 + $0x340] sm:$0xff]  ;;  %v288_v13 = vld [vmem:[#allocation2 + $0x378] sm:$0xff] }
  0x76   : > { %730 = vmatpush1.bf16.msra.mxu0 %v729_v0  ;;  %784 = vmatprep.subr.bf16.mxu1 %v783_v36  ;;  %v749_v0 = vpack.c.bf16 %v327_v57, %v321_v56  ;;  %v294_v14 = vld [vmem:[#allocation2 + $0x3a8] sm:$0xff]  ;;  %v345_v16 = vld [vmem:[#allocation2 + $0x540] sm:$0xff]  ;;  %v364_v19 = vld [vmem:[#allocation2 + $0x5d8] sm:$0xff]  ;;  %v797_v20 = vpack.c.bf16 %v281_v11, %v275_v10 }
  0x77   : > { %732 = vmatprep.subr.bf16.mxu0 %v731_v4  ;;  %v333_v4 = vld [vmem:[#allocation2 + $0x4e0] sm:$0xff]  ;;  %v358_v18 = vld [vmem:[#allocation2 + $0x5a8] sm:$0xff]  ;;  %v799_v21 = vpack.c.bf16 %v294_v14, %v288_v13  ;;  %v287_v22 = vld [vmem:[#allocation2 + $0x370] sm:$0xff] }
  0x78   : > { %v753_v12 = vpack.c.bf16 %v339_v5, %v333_v4  ;;  %v293_v23 = vld [vmem:[#allocation2 + $0x3a0] sm:$0xff]  ;;  %v300_v25 = vld [vmem:[#allocation2 + $0x3d8] sm:$0xff]  ;;  %v306_v26 = vld [vmem:[#allocation2 + $0x408] sm:$0xff] }
  0x79   : > { %786 = vmatpush1.bf16.msra.mxu1 %v785_v48  ;;  %v357_v28 = vld [vmem:[#allocation2 + $0x5a0] sm:$0xff]  ;;  %v363_v29 = vld [vmem:[#allocation2 + $0x5d0] sm:$0xff]  ;;  %v188_v31 = vld [vmem:[#allocation2 + $0x58] sm:$0xff]  ;;  %v801_v32 = vpack.c.bf16 %v293_v23, %v287_v22  ;;  %v803_v33 = vpack.c.bf16 %v306_v26, %v300_v25 }
  0x7a   : > { %734 = vmatpush1.bf16.msra.mxu0 %v733_v15  ;;  %788 = vmatprep.subr.bf16.mxu1 %v787_v49  ;;  %v755_v15 = vpack.c.bf16 %v352_v7, %v346_v6  ;;  %v299_v34 = vld [vmem:[#allocation2 + $0x3d0] sm:$0xff]  ;;  %v305_v35 = vld [vmem:[#allocation2 + $0x400] sm:$0xff]  ;;  %v761_v36 = vpack.c.bf16 %v363_v29, %v357_v28  ;;  %v312_v37 = vld [vmem:[#allocation2 + $0x438] sm:$0xff] }
  0x7b   : > { %736 = vmatprep.subr.bf16.mxu0 %v735_v17  ;;  %v351_v17 = vld [vmem:[#allocation2 + $0x570] sm:$0xff]  ;;  %v318_v38 = vld [vmem:[#allocation2 + $0x468] sm:$0xff]  ;;  %v181_v40 = vld [vmem:[#allocation2 + $0x20] sm:$0xff]  ;;  %v805_v45 = vpack.c.bf16 %v305_v35, %v299_v34 }
  0x7c   : > { %v757_v24 = vpack.c.bf16 %v351_v17, %v345_v16  ;;  %v187_v41 = vld [vmem:[#allocation2 + $0x50] sm:$0xff]  ;;  %v200_v44 = vld [vmem:[#allocation2 + $0xb8] sm:$0xff]  ;;  %v807_v46 = vpack.c.bf16 %v318_v38, %v312_v37  ;;  %v317_v48 = vld [vmem:[#allocation2 + $0x460] sm:$0xff] }
  0x7d   : > { %790 = vmatpush1.bf16.msra.mxu1 %v789_v60  ;;  %v311_v47 = vld [vmem:[#allocation2 + $0x430] sm:$0xff]  ;;  %v829_v50 = vpack.c.bf16 %v187_v41, %v181_v40  ;;  %v324_v51 = vld [vmem:[#allocation2 + $0x498] sm:$0xff]  ;;  %v193_v54 = vld [vmem:[#allocation2 + $0x80] sm:$0xff] }
  0x7e   : > { %738 = vmatpush1.bf16.msra.mxu0 %v737_v27  ;;  %792 = vmatprep.subr.bf16.mxu1 %v791_v61  ;;  %v759_v27 = vpack.c.bf16 %v364_v19, %v358_v18  ;;  %v1250_v49 = vld [vmem:[%s1238_s23] sm:$0xff]  ;;  %v206_v56 = vld [vmem:[#allocation2 + $0xe8] sm:$0xff]  ;;  %v212_v57 = vld [vmem:[#allocation2 + $0x118] sm:$0xff]  ;;  %v809_v58 = vpack.c.bf16 %v317_v48, %v311_v47 }
  0x7f   : > { %740 = vmatprep.subr.bf16.mxu0 %v739_v30  ;;  %v182_v30 = vld [vmem:[#allocation2 + $0x28] sm:$0xff]  ;;  %v323_v60 = vld [vmem:[#allocation2 + $0x490] sm:$0xff]  ;;  %v329_v61 = vld [vmem:[#allocation2 + $0x4c0] sm:$0xff]  ;;  %v835_v1 = vpack.c.bf16 %v212_v57, %v206_v56 }
  0x80   : > { %v336_v63 = vld [vmem:[#allocation2 + $0x4f8] sm:$0xff]  ;;  %v205_v2 = vld [vmem:[#allocation2 + $0xe0] sm:$0xff]  ;;  %v218_v4 = vld [vmem:[#allocation2 + $0x148] sm:$0xff]  ;;  %v813_v6 = vpack.c.bf16 %v329_v61, %v323_v60 }
  0x81   : > { %794 = vmatpush1.bf16.msra.mxu1 %v793_v8  ;;  %v224_v5 = vld [vmem:[#allocation2 + $0x178] sm:$0xff]  ;;  %v335_v8 = vld [vmem:[#allocation2 + $0x4f0] sm:$0xff]  ;;  %v217_v14 = vld [vmem:[#allocation2 + $0x140] sm:$0xff] }
  0x82   : > { %742 = vmatpush1.bf16.msra.mxu0 %v741_v39  ;;  %796 = vmatprep.subr.bf16.mxu1 %v795_v9  ;;  %v827_v39 = vpack.c.bf16 %v188_v31, %v182_v30  ;;  %v341_v9 = vld [vmem:[#allocation2 + $0x520] sm:$0xff]  ;;  %v348_v11 = vld [vmem:[#allocation2 + $0x558] sm:$0xff]  ;;  %v839_v13 = vpack.c.bf16 %v224_v5, %v218_v4  ;;  %v347_v19 = vld [vmem:[#allocation2 + $0x550] sm:$0xff] }
  0x83   : > { %744 = vmatprep.subr.bf16.mxu0 %v743_v43  ;;  %v194_v43 = vld [vmem:[#allocation2 + $0x88] sm:$0xff]  ;;  %v236_v16 = vld [vmem:[#allocation2 + $0x1d8] sm:$0xff]  ;;  %v817_v17 = vpack.c.bf16 %v341_v9, %v335_v8  ;;  %v229_v25 = vld [vmem:[#allocation2 + $0x1a0] sm:$0xff] }
  0x84   : > { %v831_v53 = vpack.c.bf16 %v200_v44, %v194_v43  ;;  %v360_v22 = vld [vmem:[#allocation2 + $0x5b8] sm:$0xff]  ;;  %v366_v23 = vld [vmem:[#allocation2 + $0x5e8] sm:$0xff]  ;;  %v235_v26 = vld [vmem:[#allocation2 + $0x1d0] sm:$0xff] }
  0x85   : > { %798 = vmatpush1.bf16.msra.mxu1 %v797_v20  ;;  %v353_v20 = vld [vmem:[#allocation2 + $0x580] sm:$0xff]  ;;  %v248_v28 = vld [vmem:[#allocation2 + $0x238] sm:$0xff]  ;;  %v823_v30 = vpack.c.bf16 %v366_v23, %v360_v22  ;;  %v359_v31 = vld [vmem:[#allocation2 + $0x5b0] sm:$0xff] }
  0x86   : > { %746 = vmatpush1.bf16.msra.mxu0 %v745_v52  ;;  %800 = vmatprep.subr.bf16.mxu1 %v799_v21  ;;  %v330_v52 = vld [vmem:[#allocation2 + $0x4c8] sm:$0xff]  ;;  %v821_v29 = vpack.c.bf16 %v353_v20, %v347_v19  ;;  %v241_v35 = vld [vmem:[#allocation2 + $0x200] sm:$0xff]  ;;  %v260_v38 = vld [vmem:[#allocation2 + $0x298] sm:$0xff] }
  0x87   : > { %748 = vmatprep.subr.bf16.mxu0 %v747_v55  ;;  %v199_v55 = vld [vmem:[#allocation2 + $0xb0] sm:$0xff]  ;;  %v811_v59 = vpack.c.bf16 %v330_v52, %v324_v51  ;;  %v254_v37 = vld [vmem:[#allocation2 + $0x268] sm:$0xff]  ;;  %v253_v43 = vld [vmem:[#allocation2 + $0x260] sm:$0xff] }
  0x88   : > { %v833_v62 = vpack.c.bf16 %v199_v55, %v193_v54  ;;  %v851_v41 = vpack.c.bf16 %v260_v38, %v254_v37  ;;  %v259_v44 = vld [vmem:[#allocation2 + $0x290] sm:$0xff]  ;;  %v278_v52 = vld [vmem:[#allocation2 + $0x328] sm:$0xff]  ;;  %v277_v56 = vld [vmem:[#allocation2 + $0x320] sm:$0xff] }
  0x89   : > { %802 = vmatpush1.bf16.msra.mxu1 %v801_v32  ;;  %v365_v32 = vld [vmem:[#allocation2 + $0x5e0] sm:$0xff]  ;;  %v853_v47 = vpack.c.bf16 %v259_v44, %v253_v43  ;;  %v271_v51 = vld [vmem:[#allocation2 + $0x2f0] sm:$0xff]  ;;  %v350_v23 = vld [vmem:[#allocation2 + $0x568] sm:$0xff] }
  0x8a   : > { %750 = vmatpush1.bf16.msra.mxu0 %v749_v0  ;;  %804 = vmatprep.subr.bf16.mxu1 %v803_v33  ;;  %v342_v0 = vld [vmem:[#allocation2 + $0x528] sm:$0xff]  ;;  %v845_v33 = vpack.c.bf16 %v235_v26, %v229_v25  ;;  %v283_v57 = vld [vmem:[#allocation2 + $0x350] sm:$0xff]  ;;  %v301_v4 = vld [vmem:[#allocation2 + $0x3e0] sm:$0xff] }
  0x8b   : > { %752 = vmatprep.subr.bf16.mxu0 %v751_v3  ;;  %v211_v3 = vld [vmem:[#allocation2 + $0x110] sm:$0xff]  ;;  %v815_v7 = vpack.c.bf16 %v342_v0, %v336_v63  ;;  %v861_v60 = vpack.c.bf16 %v283_v57, %v277_v56  ;;  %v302_v0 = vld [vmem:[#allocation2 + $0x3e8] sm:$0xff] }
  0x8c   : > { %v837_v10 = vpack.c.bf16 %v211_v3, %v205_v2  ;;  %v295_v63 = vld [vmem:[#allocation2 + $0x3b0] sm:$0xff] }
  0x8d   : > { %806 = vmatpush1.bf16.msra.mxu1 %v805_v45  ;;  %v266_v45 = vld [vmem:[#allocation2 + $0x2c8] sm:$0xff]  ;;  %v307_v5 = vld [vmem:[#allocation2 + $0x410] sm:$0xff] }
  0x8e   : > { %754 = vmatpush1.bf16.msra.mxu0 %v753_v12  ;;  %808 = vmatprep.subr.bf16.mxu1 %v807_v46  ;;  %v354_v12 = vld [vmem:[#allocation2 + $0x588] sm:$0xff]  ;;  %v272_v46 = vld [vmem:[#allocation2 + $0x2f8] sm:$0xff]  ;;  %v869_v8 = vpack.c.bf16 %v307_v5, %v301_v4  ;;  %v343_v22 = vld [vmem:[#allocation2 + $0x530] sm:$0xff] }
  0x8f   : > { %756 = vmatprep.subr.bf16.mxu0 %v755_v15  ;;  %v230_v15 = vld [vmem:[#allocation2 + $0x1a8] sm:$0xff]  ;;  %v819_v18 = vpack.c.bf16 %v354_v12, %v348_v11  ;;  %v855_v48 = vpack.c.bf16 %v272_v46, %v266_v45  ;;  %v319_v11 = vld [vmem:[#allocation2 + $0x470] sm:$0xff] }
  0x90   : > { %v326_v12 = vld [vmem:[#allocation2 + $0x4a8] sm:$0xff] }
  0x91   : > { %810 = vmatpush1.bf16.msra.mxu1 %v809_v58  ;;  %v290_v58 = vld [vmem:[#allocation2 + $0x388] sm:$0xff] }
  0x92   : > { %758 = vmatpush1.bf16.msra.mxu0 %v757_v24  ;;  %812 = vmatprep.subr.bf16.mxu1 %v811_v59  ;;  %v843_v24 = vpack.c.bf16 %v236_v16, %v230_v15  ;;  %v296_v59 = vld [vmem:[#allocation2 + $0x3b8] sm:$0xff]  ;;  %v325_v15 = vld [vmem:[#allocation2 + $0x4a0] sm:$0xff]  ;;  %v331_v16 = vld [vmem:[#allocation2 + $0x4d0] sm:$0xff] }
  0x93   : > { %760 = vmatprep.subr.bf16.mxu0 %v759_v27  ;;  %v242_v27 = vld [vmem:[#allocation2 + $0x208] sm:$0xff]  ;;  %v863_v61 = vpack.c.bf16 %v296_v59, %v290_v58  ;;  %v877_v19 = vpack.c.bf16 %v331_v16, %v325_v15 }
  0x94   : > { %v847_v34 = vpack.c.bf16 %v248_v28, %v242_v27  ;;  %v349_v27 = vld [vmem:[#allocation2 + $0x560] sm:$0xff]  ;;  %v355_v28 = vld [vmem:[#allocation2 + $0x590] sm:$0xff] }
  0x95   : > { %814 = vmatpush1.bf16.msra.mxu1 %v813_v6  ;;  %v314_v6 = vld [vmem:[#allocation2 + $0x448] sm:$0xff] }
  0x96   : > { %762 = vmatpush1.bf16.msra.mxu0 %v761_v36  ;;  %816 = vmatprep.subr.bf16.mxu1 %v815_v7  ;;  %v247_v36 = vld [vmem:[#allocation2 + $0x230] sm:$0xff]  ;;  %v320_v7 = vld [vmem:[#allocation2 + $0x478] sm:$0xff] }
  0x97   : > { %828 = vmatprep.subr.bf16.mxu0 %v827_v39  ;;  %v825_v39 = vpack.c.bf16 %v365_v32, %v359_v31  ;;  %v849_v40 = vpack.c.bf16 %v247_v36, %v241_v35  ;;  %v871_v9 = vpack.c.bf16 %v320_v7, %v314_v6  ;;  %v885_v31 = vpack.c.bf16 %v355_v28, %v349_v27 }
  0x99   : > { %434 = vmatmul.mubr.f32.vlgmr.msra.gmra.mrb[0].mxu0 %v1250_v49  ;;  %818 = vmatpush1.bf16.msra.mxu1 %v817_v17  ;;  %v338_v17 = vld [vmem:[#allocation2 + $0x508] sm:$0xff] }
  0x9a   : > { %830 = vmatpush1.bf16.msra.mxu0 %v829_v50  ;;  %575 = vmatprep.mubr.f32.mxu0 %v1245_v42  ;;  %v223_v42 = vld [vmem:[#allocation2 + $0x170] sm:$0xff]  ;;  %v265_v50 = vld [vmem:[#allocation2 + $0x2c0] sm:$0xff] }
  0x9b   : > { %832 = vmatprep.subr.bf16.mxu0 %v831_v53  ;;  %v841_v21 = vpack.c.bf16 %v223_v42, %v217_v14  ;;  %820 = vmatprep.subr.bf16.mxu1 %v819_v18  ;;  %v284_v53 = vld [vmem:[#allocation2 + $0x358] sm:$0xff]  ;;  %v857_v54 = vpack.c.bf16 %v271_v51, %v265_v50 }
  0x9c   : > { %v859_v55 = vpack.c.bf16 %v284_v53, %v278_v52  ;;  %v344_v18 = vld [vmem:[#allocation2 + $0x538] sm:$0xff] }
  0x9d   : > { %822 = vmatpush1.bf16.msra.mxu1 %v821_v29  ;;  %v879_v20 = vpack.c.bf16 %v344_v18, %v338_v17  ;;  %v362_v29 = vld [vmem:[#allocation2 + $0x5c8] sm:$0xff] }
  0x9e   : > { %834 = vmatpush1.bf16.msra.mxu0 %v833_v62  ;;  %824 = vmatprep.subr.bf16.mxu1 %v823_v30  ;;  %v289_v62 = vld [vmem:[#allocation2 + $0x380] sm:$0xff]  ;;  %v368_v30 = vld [vmem:[#allocation2 + $0x5f8] sm:$0xff] }
  0x9f   : > { %836 = vmatprep.subr.bf16.mxu0 %v835_v1  ;;  %v308_v1 = vld [vmem:[#allocation2 + $0x418] sm:$0xff]  ;;  %v865_v2 = vpack.c.bf16 %v295_v63, %v289_v62  ;;  %v887_v32 = vpack.c.bf16 %v368_v30, %v362_v29 }
  0xa0   : > { %v867_v3 = vpack.c.bf16 %v308_v1, %v302_v0 }
  0xa1   : > { %826 = vmatpush1.bf16.msra.mxu1 %v825_v39 }
  0xa2   : > { %838 = vmatpush1.bf16.msra.mxu0 %v837_v10  ;;  %v313_v10 = vld [vmem:[#allocation2 + $0x440] sm:$0xff] }
  0xa3   : > { %840 = vmatprep.subr.bf16.mxu0 %v839_v13  ;;  %v332_v13 = vld [vmem:[#allocation2 + $0x4d8] sm:$0xff]  ;;  %v873_v14 = vpack.c.bf16 %v319_v11, %v313_v10 }
  0xa4   : > { %505 = vmatmul.mubr.f32.vlgmr.msra.gmra.mrb[0].mxu1 %v1250_v49  ;;  %v875_v42 = vpack.c.bf16 %v332_v13, %v326_v12 }
  0xa6   : > { %842 = vmatpush1.bf16.msra.mxu0 %v841_v21  ;;  %v337_v21 = vld [vmem:[#allocation2 + $0x500] sm:$0xff] }
  0xa7   : > { %844 = vmatprep.subr.bf16.mxu0 %v843_v24  ;;  %v356_v24 = vld [vmem:[#allocation2 + $0x598] sm:$0xff]  ;;  %v881_v25 = vpack.c.bf16 %v343_v22, %v337_v21 }
  0xa8   : > { %v883_v26 = vpack.c.bf16 %v356_v24, %v350_v23 }
  0xaa   : > { %846 = vmatpush1.bf16.msra.mxu0 %v845_v33  ;;  %v361_v33 = vld [vmem:[#allocation2 + $0x5c0] sm:$0xff] }
  0xab   : > { %848 = vmatprep.subr.bf16.mxu0 %v847_v34  ;;  %v367_v34 = vld [vmem:[#allocation2 + $0x5f0] sm:$0xff] }
  0xac   : > { %v889_v35 = vpack.c.bf16 %v367_v34, %v361_v33 }
  0xae   : > { %850 = vmatpush1.bf16.msra.mxu0 %v849_v40 }
  0xaf   : > { %852 = vmatprep.subr.bf16.mxu0 %v851_v41 }
  0xb2   : > { %854 = vmatpush1.bf16.msra.mxu0 %v853_v47 }
  0xb3   : > { %856 = vmatprep.subr.bf16.mxu0 %v855_v48 }
  0xb6   : > { %858 = vmatpush1.bf16.msra.mxu0 %v857_v54 }
  0xb7   : > { %860 = vmatprep.subr.bf16.mxu0 %v859_v55 }
  0xba   : > { %862 = vmatpush1.bf16.msra.mxu0 %v861_v60 }
  0xbb   : > { %864 = vmatprep.subr.bf16.mxu0 %v863_v61 }
  0xbe   : > { %866 = vmatpush1.bf16.msra.mxu0 %v865_v2 }
  0xbf   : > { %868 = vmatprep.subr.bf16.mxu0 %v867_v3 }
  0xc2   : > { %870 = vmatpush1.bf16.msra.mxu0 %v869_v8 }
  0xc3   : > { %872 = vmatprep.subr.bf16.mxu0 %v871_v9 }
  0xc6   : > { %874 = vmatpush1.bf16.msra.mxu0 %v873_v14 }
  0xc7   : > { %876 = vmatprep.subr.bf16.mxu0 %v875_v42 }
  0xca   : > { %878 = vmatpush1.bf16.msra.mxu0 %v877_v19 }
  0xcb   : > { %880 = vmatprep.subr.bf16.mxu0 %v879_v20 }
  0xce   : > { %882 = vmatpush1.bf16.msra.mxu0 %v881_v25 }
  0xcf   : > { %884 = vmatprep.subr.bf16.mxu0 %v883_v26 }
  0xd2   : > { %886 = vmatpush1.bf16.msra.mxu0 %v885_v31 }
  0xd3   : > { %888 = vmatprep.subr.bf16.mxu0 %v887_v32 }
  0xd6   : > { %890 = vmatpush1.bf16.msra.mxu0 %v889_v35 }
  0xd9   : > { %576 = vmatmul.mubr.f32.vlgmr.msra.gmra.mrb[2].mxu0 %v1250_v49 }
 0x16c   : > { %v435_v36 = vpop.f32.mrb[0].mxu0 }
 0x16d   : > { %582 = vst [vmem:[%s174_s17] sm:$0xff] %v435_v36  ;;  %v437_v37 = vpop.f32.mrb[1].mxu0 }
 0x16e   : > { %583 = vst [vmem:[%s174_s17 + $0x8] sm:$0xff] %v437_v37 }
 0x177   : > { %v506_v38 = vpop.f32.mrb[0].mxu1 }
 0x178   : > { %584 = vst [vmem:[%s174_s17 + $0x10] sm:$0xff] %v506_v38  ;;  %v508_v39 = vpop.f32.mrb[1].mxu1 }
 0x179   : > { %585 = vst [vmem:[%s174_s17 + $0x18] sm:$0xff] %v508_v39 }
 0x1ac   : > { %v577_v40 = vpop.f32.mrb[2].mxu0 }
 0x1ad   : > { %586 = vst [vmem:[%s174_s17 + $0x20] sm:$0xff] %v577_v40  ;;  %v579_v49 = vpop.f32.mrb[3].mxu0 }
 0x1ae   : > { %587 = vst [vmem:[%s174_s17 + $0x28] sm:$0xff] %v579_v49 }
 0x1af   : > { %1023 = shalt.err (!%p1020_p7)
}
 0x1b0   : > { %s1024_s7 = scalar_lea.hbm %s1261_s30, 768  ;;  %s1028_s25 = scalar_lea.hbm %s1306_s2, 4608 }
 0x1b1   : > { %p1025_p9 = scmp.ne.s32.totalorder %s1261_s30, %s1024_s7  ;;  %p1029_p0 = scmp.lt.u32.totalorder %s1261_s30, %s1306_s2 }
 0x1b2   : > { %p1030_p2 = scmp.lt.u32.totalorder %s1028_s25, %s1024_s7  ;;  %p1032_p1 = scmp.lt.u32.totalorder %s1024_s7, %s1261_s30 }
 0x1b3   : > { %p1026_p11 = pnand %p1025_p9, %p1185_p12 }
 0x1b4   : > { %p1031_p10 = por %p1030_p2, %p1029_p0 }
 0x1b5   : > { %p1027_p5 = pneg %p1026_p11 }
 0x1b6   : > { %p1033_p4 = por %p1032_p1, %p1031_p10 }
 0x1b8   : > { %p1034_p6 = pnand %p1033_p4, %p1027_p5 }
 0x1ba   : > { %1037 = shalt.err (!%p1034_p6)
}
 0x1bb   : > { %899 = dma.vmem_to_hbm [thread:$0]  (%p1185_p12), %s1263_s22, 768, %s1261_s30, %s589_s3  }
 0x1bc PF: > { %p916_p8 = scmp.ge.s32.totalorder %s1080_s12, 2  ;;  %s615_s19 = sand.u32 1, %s1068_s9  }
 0x1bd   : > { %p1321_p13 = scmp.ne.s32.totalorder %s1311_s16, 0  ;;  %s616_s23 = scalar_lea.sflag [#allocation4], %s615_s19 }
 0x1bf   : > { %p910_p3 = pnand %p916_p8, %p1321_p13 }
 0x1c1   : > { %1063 = dma.done.wait (!%p910_p3), %s616_s23, 768  }
 0x1c2   : > { %1065 = vsyncadd (!%p910_p3), %s616_s23, 4294966528  ;;  %p16_p7 = scmp.ge.s32.totalorder %s1155_s21, 8   ;;  %s1322_s9 = smov %s1072_s10 }
 0x1c3   : > { %s1323_s10 = smov %s1076_s11  ;;  %s1324_s11 = smov %s1181_s8 }
 0x1c4   : > { %s1325_s12 = smov %s1155_s21  ;;  %18 = sbr.rel (!%p16_p7) target bundleno = 6 (0x6), region = 78 }
 0x1cb   :  { %621 = vsyncpa [#allocation3], 1 }
 0x1cc   :  { %623 = vsyncpa [#allocation3 + $0x1], 1 }
 0x1cd   :  { %624 = vsyncpa [#allocation6], 1 }
 0x1ce   :  { %626 = vsyncpa [#allocation6 + $0x1], 1 }
 0x1cf   :  { %627 = vsyncpa [#allocation4], 1 }
 0x1d0   :  { %629 = vsyncpa [#allocation4 + $0x1], 1 }

</bundles_post_ra>
